<compile_context>
chip_gen: v7x
topology: tpu7x:2x2x1
jax: 0.10.0
libtpu: 0.0.40
codegen_flags: <defaults>
</compile_context>

<pallas_src>
import math

import jax
import jax.numpy as jnp
from jax.experimental import pallas as pl
from jax.experimental.pallas import tpu as pltpu


def _gat_scalar_kernel(src_ref, dstT_ref, red_ref, adj_ref, out_ref):
    """One destination-column tile; all heads fused; writes this tile's partial sum.

    src_ref:  (N, H)    f32   z_i . a_src_h                        (grid-invariant)
    dstT_ref: (H, TN)   f32   z_j . a_dst_h, pre-transposed
    red_ref:  (R, N)    f32   row 0 = ones, row 1+h = sum_d z_{i,d} (grid-invariant)
    adj_ref:  (N, TN)   int8  adj[i, j] != 0  <=>  edge i -> (tile_start + j)
    out_ref:  (1, 1, 1) f32   partial sum of head-output entries for this tile
    """
    num_heads = src_ref.shape[1]

    is_edge = adj_ref[...] != 0                                       # (N, TN)
    red = red_ref[...]                                                # (R, N)

    total = jnp.float32(0.0)
    for hd in range(num_heads):                  # static unroll; num_heads is small
        s_src = src_ref[:, hd:hd + 1]                                 # (N, 1)
        s_dst = dstT_ref[hd:hd + 1, :]                                # (1, TN)
        e = s_src + s_dst                                             # (N, TN)
        e = jnp.maximum(e, jnp.float32(0.01) * e)                     # leaky_relu (torch default)
        # Softmax is shift invariant: take the max over unmasked scores and zero the
        # non-edges only after the exp (saves one select per element per head).
        m = jnp.max(e, axis=0, keepdims=True)                         # (1, TN)
        p = jnp.where(is_edge, jnp.exp(e - m), jnp.float32(0.0))      # unnormalized attention
        # denom_j = sum_i p_ij and numer_j = sum_i p_ij * zsum_i via one small MXU
        # matmul against the precomputed [ones; zsum] rows (keeps the VALU slot free).
        dn = jnp.dot(red, p, preferred_element_type=jnp.float32)      # (R, TN)
        denom = dn[0:1, :]
        numer = dn[hd + 1:hd + 2, :]
        # Deferred softmax normalization: one EUP reciprocal per destination column
        # (guarded so destinations with no incoming edge contribute 0, not NaN).
        inv = pl.reciprocal(jnp.where(denom > 0, denom, jnp.float32(1.0)), approx=True)
        total = total + jnp.sum(numer * inv)

    out_ref[...] = jnp.full((1, 1, 1), total, dtype=jnp.float32)


def _derive_tiling(n, num_heads, red_rows):
    """Destination tile width, padded destination extent, and a VMEM limit with headroom."""
    try:
        cap = int(pltpu.get_tpu_info().vmem_capacity_bytes)
    except Exception:
        cap = 64 * 2**20            # unknown -> assume the smallest generation (v7x)
    budget = (cap * 3) // 4         # ~25% headroom for compiler scratch / pipelining

    # Per destination column: int8 adjacency double-buffer + ~6 live (N, TN) f32
    # temporaries in the per-head loop.  Resident inputs counted double-buffered in
    # case single-buffering (pl.Buffered) is unavailable in this jax version.
    resident = 4 * n * (2 * num_heads + 2 * red_rows) + (1 << 16)
    per_col = 2 * n + 24 * n + 8 * num_heads + 8 * red_rows
    tn_cap = (max(budget - resident, 0) // max(per_col, 1)) // 128 * 128
    tn_cap = int(max(128, min(tn_cap, 1024)))
    # TODO(synk): for N so large that even TN=128 overflows VMEM, add a source-row grid
    # axis with an online-softmax carry instead of full (N, TN) temporaries.

    if n <= tn_cap:
        return n, n, int(budget)                 # single full-extent tile, no padding
    n_dst_pad = -(-n // tn_cap) * tn_cap         # lane-aligned padding of the dst axis
    return tn_cap, n_dst_pad, int(budget)


def _pallas_gat_sum(src_scores, dst_scores_t, red, adj_i8, *, tn, num_tiles, vmem_limit):
    n, num_heads = src_scores.shape
    red_rows = red.shape[0]

    def run(resident_pipeline_mode):
        kw = ({} if resident_pipeline_mode is None
              else {"pipeline_mode": resident_pipeline_mode})
        grid_spec = pltpu.PrefetchScalarGridSpec(
            num_scalar_prefetch=0,
            grid=(num_tiles,),
            in_specs=[
                pl.BlockSpec((n, num_heads), lambda t: (0, 0), **kw),    # src scores (resident)
                pl.BlockSpec((num_heads, tn), lambda t: (0, t)),         # dst scores, this tile
                pl.BlockSpec((red_rows, n), lambda t: (0, 0), **kw),     # [ones; zsum] (resident)
                pl.BlockSpec((n, tn), lambda t: (0, t)),                 # adjacency columns
            ],
            out_specs=pl.BlockSpec((1, 1, 1), lambda t: (t, 0, 0)),      # per-tile partial sum
        )
        return pl.pallas_call(
            _gat_scalar_kernel,
            out_shape=jax.ShapeDtypeStruct((num_tiles, 1, 1), jnp.float32),
            grid_spec=grid_spec,
            compiler_params=pltpu.CompilerParams(
                dimension_semantics=("parallel",),   # independent tiles -> both v7x TCs
                vmem_limit_bytes=vmem_limit,
            ),
        )(src_scores, dst_scores_t, red, adj_i8)

    try:
        partials = run(pl.Buffered(1))    # single-buffer the grid-invariant inputs
    except Exception:                     # pipeline_mode / Buffered unsupported here
        partials = run(None)
    return jnp.sum(partials)


def multi_head_gat(h, W, a_src, a_dst, adj):
    """Scalar = mean over (heads, nodes, features), matching MultiHeadGATLayer.forward."""
    num_heads, in_dim, out_dim = W.shape
    n = h.shape[0]
    h32 = h.astype(jnp.float32)
    hi = jax.lax.Precision.HIGHEST

    # Fold attention vectors / feature row-sum into the fc weights, then project ONCE in
    # the wrapper (grid-invariant work hoisted out of the kernel):
    #   x @ (W_h a_src_h) == (x W_h) . a_src_h, etc.
    p_src = jnp.einsum("hio,ho->ih", W, a_src[:, 0, :]).astype(jnp.float32)   # (in_dim, H)
    p_dst = jnp.einsum("hio,ho->ih", W, a_dst[:, 0, :]).astype(jnp.float32)   # (in_dim, H)
    p_sum = jnp.transpose(jnp.sum(W, axis=2)).astype(jnp.float32)             # (in_dim, H)

    src_scores = jnp.dot(h32, p_src, precision=hi)                   # (N, H)  z_i . a_src_h
    dst_scores_t = jnp.transpose(jnp.dot(h32, p_dst, precision=hi))  # (H, N)  z_j . a_dst_h
    zsum_rows = jnp.transpose(jnp.dot(h32, p_sum, precision=hi))     # (H, N)  sum_d z_{i,d}

    # Reduction matrix for the in-kernel MXU column sums: row 0 = ones (-> denominator),
    # row 1+h = zsum_h (-> numerator).  Rows padded to a sublane multiple of 8.
    red_rows = -(-(num_heads + 1) // 8) * 8
    red = jnp.concatenate([jnp.ones((1, n), jnp.float32), zsum_rows], axis=0)
    red = jnp.pad(red, ((0, red_rows - (num_heads + 1)), (0, 0)))

    # Adjacency is pure mask data: int8 (4x less HBM/VMEM than f32); adj > 0 == edge,
    # matching the reference semantics.
    adj_i8 = (adj > 0).astype(jnp.int8)

    tn, n_dst_pad, vmem_limit = _derive_tiling(n, num_heads, red_rows)
    if n_dst_pad > n:
        # Pad the destination (lane) axis with zero columns: they have no edges, so
        # denom == 0 and they contribute exactly 0 through the reciprocal guard.
        adj_i8 = jnp.pad(adj_i8, ((0, 0), (0, n_dst_pad - n)))
        dst_scores_t = jnp.pad(dst_scores_t, ((0, 0), (0, n_dst_pad - n)))
    num_tiles = n_dst_pad // tn

    total = _pallas_gat_sum(src_scores, dst_scores_t, red, adj_i8,
                            tn=tn, num_tiles=num_tiles, vmem_limit=vmem_limit)

    # torch.mean(torch.stack(head_outs)) == global sum / (H * N * out_dim)
    return total / jnp.float32(num_heads * n * out_dim)


def init_params(key, in_dim, out_dim, num_heads):
    """Xavier-normal with gain=sqrt(2) (calculate_gain('relu')), deterministic."""
    gain = math.sqrt(2.0)
    k1, k2 = jax.random.split(key)
    # fc.weight: (out_dim, in_dim); we store its transpose (in_dim, out_dim) per head.
    std_fc = gain * math.sqrt(2.0 / (in_dim + out_dim))
    W = std_fc * jax.random.normal(k1, (num_heads, in_dim, out_dim), jnp.float32)
    # attn_fc.weight: (1, 2*out_dim); split into src / dst halves.
    std_a = gain * math.sqrt(2.0 / (2 * out_dim + 1))
    a = std_a * jax.random.normal(k2, (num_heads, 1, 2 * out_dim), jnp.float32)
    return W, a[:, :, :out_dim], a[:, :, out_dim:]


def _reference(h, W, a_src, a_dst, adj):
    """Pure-JAX reference of MultiHeadGATLayer.forward (dense adjacency)."""
    outs = []
    mask = adj > 0
    for hd in range(W.shape[0]):
        z = h @ W[hd]                                                     # (N, D)
        e = (z @ a_src[hd, 0])[:, None] + (z @ a_dst[hd, 0])[None, :]     # (N, N), e[i, j]
        e = jnp.where(e > 0, e, 0.01 * e)
        e = jnp.where(mask, e, -1e30)
        e = e - jnp.max(e, axis=0, keepdims=True)
        p = jnp.where(mask, jnp.exp(e), 0.0)
        alpha = p / jnp.maximum(jnp.sum(p, axis=0, keepdims=True), 1e-30)
        outs.append(alpha.T @ z)                                          # out_j = sum_i a_ij z_i
    return jnp.mean(jnp.stack(outs))


if __name__ == "__main__":
    N, in_dim, out_dim, num_heads = 16, 8, 16, 4

    key = jax.random.PRNGKey(0)
    kh, kadj, kp = jax.random.split(key, 3)

    h = jax.random.normal(kh, (N, in_dim), dtype=jnp.float32)

    # Random directed graph + self-loops so every node has >= 1 incoming edge.
    adj = (jax.random.uniform(kadj, (N, N)) < 0.3).astype(jnp.float32)
    adj = jnp.maximum(adj, jnp.eye(N, dtype=jnp.float32))

    W, a_src, a_dst = init_params(kp, in_dim, out_dim, num_heads)

    out = multi_head_gat(h, W, a_src, a_dst, adj)
    jax.block_until_ready(out)
    assert out.shape == ()  # module returns a scalar (torch.mean over stacked heads)

    ref = _reference(h, W, a_src, a_dst, adj)
    err = abs(float(out) - float(ref))
    assert err <= 2e-2 + 5e-2 * abs(float(ref)), (float(out), float(ref))

    print("KERNEL_OK")
</pallas_src>

<mosaic_0001>
module attributes {stable_mosaic.version = 11 : i64} {
  func.func @_gat_scalar_kernel(%arg0: i32, %arg1: memref<16x4xf32, #tpu.memory_space<vmem>>, %arg2: memref<4x16xf32, #tpu.memory_space<vmem>>, %arg3: memref<8x16xf32, #tpu.memory_space<vmem>>, %arg4: memref<16x16xi8, #tpu.memory_space<vmem>>, %arg5: memref<1x1x1xf32, #tpu.memory_space<vmem>>) attributes {dimension_semantics = [#tpu.dimension_semantics<parallel>], iteration_bounds = array<i64: 1>, scalar_prefetch = 0 : i64, scratch_operands = 0 : i64, tpu.core_type = #tpu.core_type<tc>, window_params = [{pipeline_mode = #tpu.pipeline_mode<synchronous>, transform_indices = @transform_0, window_bounds = array<i64: 16, 4>}, {transform_indices = @transform_1, window_bounds = array<i64: 4, 16>}, {pipeline_mode = #tpu.pipeline_mode<synchronous>, transform_indices = @transform_2, window_bounds = array<i64: 8, 16>}, {transform_indices = @transform_3, window_bounds = array<i64: 16, 16>}, {transform_indices = @transform_4, window_bounds = array<i64: 1, 1, 1>}]} {
    %c0 = arith.constant 0 : index
    %c0_0 = arith.constant 0 : index
    %0 = vector.load %arg4[%c0, %c0_0] : memref<16x16xi8, #tpu.memory_space<vmem>>, vector<16x16xi8>
    %c0_i8 = arith.constant 0 : i8
    %1 = vector.broadcast %c0_i8 : i8 to vector<16x16xi8>
    %2 = arith.cmpi ne, %0, %1 : vector<16x16xi8>
    %c0_1 = arith.constant 0 : index
    %c0_2 = arith.constant 0 : index
    %3 = vector.load %arg3[%c0_1, %c0_2] : memref<8x16xf32, #tpu.memory_space<vmem>>, vector<8x16xf32>
    %c0_3 = arith.constant 0 : index
    %c0_4 = arith.constant 0 : index
    %4 = vector.load %arg1[%c0_3, %c0_4] : memref<16x4xf32, #tpu.memory_space<vmem>>, vector<16x1xf32>
    %c0_5 = arith.constant 0 : index
    %c0_6 = arith.constant 0 : index
    %5 = vector.load %arg2[%c0_5, %c0_6] : memref<4x16xf32, #tpu.memory_space<vmem>>, vector<1x16xf32>
    %6 = vector.broadcast %4 : vector<16x1xf32> to vector<16x16xf32>
    %7 = vector.broadcast %5 : vector<1x16xf32> to vector<16x16xf32>
    %8 = arith.addf %6, %7 : vector<16x16xf32>
    %cst = arith.constant 0.00999999977 : f32
    %9 = vector.broadcast %cst : f32 to vector<16x16xf32>
    %10 = arith.mulf %9, %8 : vector<16x16xf32>
    %11 = arith.maximumf %8, %10 : vector<16x16xf32>
    %cst_7 = arith.constant dense<0xFF800000> : vector<16xf32>
    %12 = vector.multi_reduction <maximumf>, %11, %cst_7 [0] : vector<16x16xf32> to vector<16xf32>
    %13 = vector.shape_cast %12 : vector<16xf32> to vector<1x16xf32>
    %14 = vector.broadcast %13 : vector<1x16xf32> to vector<16x16xf32>
    %15 = arith.subf %11, %14 : vector<16x16xf32>
    %16 = math.exp %15 : vector<16x16xf32>
    %cst_8 = arith.constant 0.000000e+00 : f32
    %17 = vector.broadcast %cst_8 : f32 to vector<16x16xf32>
    %18 = arith.select %2, %16, %17 : vector<16x16xi1>, vector<16x16xf32>
    %cst_9 = arith.constant dense<0.000000e+00> : vector<8x16xf32>
    %19 = tpu.matmul %3, %18, %cst_9 {dimension_numbers = #tpu.dot_dimension_numbers<[1], [0], [0], [1], [0, 0, 1, 1], [], []>} : vector<8x16xf32>, vector<16x16xf32>, vector<8x16xf32> -> vector<8x16xf32>
    %20 = vector.extract_strided_slice %19 {offsets = [0, 0], sizes = [1, 16], strides = [1, 1]} : vector<8x16xf32> to vector<1x16xf32>
    %21 = vector.extract_strided_slice %19 {offsets = [1, 0], sizes = [1, 16], strides = [1, 1]} : vector<8x16xf32> to vector<1x16xf32>
    %cst_10 = arith.constant 0.000000e+00 : f32
    %22 = vector.broadcast %cst_10 : f32 to vector<1x16xf32>
    %23 = arith.cmpf ogt, %20, %22 : vector<1x16xf32>
    %cst_11 = arith.constant 1.000000e+00 : f32
    %24 = vector.broadcast %cst_11 : f32 to vector<1x16xf32>
    %25 = arith.select %23, %20, %24 : vector<1x16xi1>, vector<1x16xf32>
    %26 = tpu.reciprocal %25 {approx = true} : vector<1x16xf32> -> vector<1x16xf32>
    %27 = arith.mulf %21, %26 : vector<1x16xf32>
    %28 = vector.shape_cast %27 : vector<1x16xf32> to vector<1x1x16xf32>
    %cst_12 = arith.constant dense<0.000000e+00> : vector<1xf32>
    %29 = vector.multi_reduction <add>, %28, %cst_12 [1, 2] : vector<1x1x16xf32> to vector<1xf32>
    %30 = vector.shape_cast %29 : vector<1xf32> to vector<1x1x1xf32>
    %31 = vector.extract %30[0, 0, 0] : f32 from vector<1x1x1xf32>
    %cst_13 = arith.constant 0.000000e+00 : f32
    %32 = arith.addf %cst_13, %31 : f32
    %c0_14 = arith.constant 0 : index
    %c1 = arith.constant 1 : index
    %33 = vector.load %arg1[%c0_14, %c1] : memref<16x4xf32, #tpu.memory_space<vmem>>, vector<16x1xf32>
    %c1_15 = arith.constant 1 : index
    %c0_16 = arith.constant 0 : index
    %34 = vector.load %arg2[%c1_15, %c0_16] : memref<4x16xf32, #tpu.memory_space<vmem>>, vector<1x16xf32>
    %35 = vector.broadcast %33 : vector<16x1xf32> to vector<16x16xf32>
    %36 = vector.broadcast %34 : vector<1x16xf32> to vector<16x16xf32>
    %37 = arith.addf %35, %36 : vector<16x16xf32>
    %cst_17 = arith.constant 0.00999999977 : f32
    %38 = vector.broadcast %cst_17 : f32 to vector<16x16xf32>
    %39 = arith.mulf %38, %37 : vector<16x16xf32>
    %40 = arith.maximumf %37, %39 : vector<16x16xf32>
    %cst_18 = arith.constant dense<0xFF800000> : vector<16xf32>
    %41 = vector.multi_reduction <maximumf>, %40, %cst_18 [0] : vector<16x16xf32> to vector<16xf32>
    %42 = vector.shape_cast %41 : vector<16xf32> to vector<1x16xf32>
    %43 = vector.broadcast %42 : vector<1x16xf32> to vector<16x16xf32>
    %44 = arith.subf %40, %43 : vector<16x16xf32>
    %45 = math.exp %44 : vector<16x16xf32>
    %cst_19 = arith.constant 0.000000e+00 : f32
    %46 = vector.broadcast %cst_19 : f32 to vector<16x16xf32>
    %47 = arith.select %2, %45, %46 : vector<16x16xi1>, vector<16x16xf32>
    %cst_20 = arith.constant dense<0.000000e+00> : vector<8x16xf32>
    %48 = tpu.matmul %3, %47, %cst_20 {dimension_numbers = #tpu.dot_dimension_numbers<[1], [0], [0], [1], [0, 0, 1, 1], [], []>} : vector<8x16xf32>, vector<16x16xf32>, vector<8x16xf32> -> vector<8x16xf32>
    %49 = vector.extract_strided_slice %48 {offsets = [0, 0], sizes = [1, 16], strides = [1, 1]} : vector<8x16xf32> to vector<1x16xf32>
    %50 = vector.extract_strided_slice %48 {offsets = [2, 0], sizes = [1, 16], strides = [1, 1]} : vector<8x16xf32> to vector<1x16xf32>
    %cst_21 = arith.constant 0.000000e+00 : f32
    %51 = vector.broadcast %cst_21 : f32 to vector<1x16xf32>
    %52 = arith.cmpf ogt, %49, %51 : vector<1x16xf32>
    %cst_22 = arith.constant 1.000000e+00 : f32
    %53 = vector.broadcast %cst_22 : f32 to vector<1x16xf32>
    %54 = arith.select %52, %49, %53 : vector<1x16xi1>, vector<1x16xf32>
    %55 = tpu.reciprocal %54 {approx = true} : vector<1x16xf32> -> vector<1x16xf32>
    %56 = arith.mulf %50, %55 : vector<1x16xf32>
    %57 = vector.shape_cast %56 : vector<1x16xf32> to vector<1x1x16xf32>
    %cst_23 = arith.constant dense<0.000000e+00> : vector<1xf32>
    %58 = vector.multi_reduction <add>, %57, %cst_23 [1, 2] : vector<1x1x16xf32> to vector<1xf32>
    %59 = vector.shape_cast %58 : vector<1xf32> to vector<1x1x1xf32>
    %60 = vector.extract %59[0, 0, 0] : f32 from vector<1x1x1xf32>
    %61 = arith.addf %32, %60 : f32
    %c0_24 = arith.constant 0 : index
    %c2 = arith.constant 2 : index
    %62 = vector.load %arg1[%c0_24, %c2] : memref<16x4xf32, #tpu.memory_space<vmem>>, vector<16x1xf32>
    %c2_25 = arith.constant 2 : index
    %c0_26 = arith.constant 0 : index
    %63 = vector.load %arg2[%c2_25, %c0_26] : memref<4x16xf32, #tpu.memory_space<vmem>>, vector<1x16xf32>
    %64 = vector.broadcast %62 : vector<16x1xf32> to vector<16x16xf32>
    %65 = vector.broadcast %63 : vector<1x16xf32> to vector<16x16xf32>
    %66 = arith.addf %64, %65 : vector<16x16xf32>
    %cst_27 = arith.constant 0.00999999977 : f32
    %67 = vector.broadcast %cst_27 : f32 to vector<16x16xf32>
    %68 = arith.mulf %67, %66 : vector<16x16xf32>
    %69 = arith.maximumf %66, %68 : vector<16x16xf32>
    %cst_28 = arith.constant dense<0xFF800000> : vector<16xf32>
    %70 = vector.multi_reduction <maximumf>, %69, %cst_28 [0] : vector<16x16xf32> to vector<16xf32>
    %71 = vector.shape_cast %70 : vector<16xf32> to vector<1x16xf32>
    %72 = vector.broadcast %71 : vector<1x16xf32> to vector<16x16xf32>
    %73 = arith.subf %69, %72 : vector<16x16xf32>
    %74 = math.exp %73 : vector<16x16xf32>
    %cst_29 = arith.constant 0.000000e+00 : f32
    %75 = vector.broadcast %cst_29 : f32 to vector<16x16xf32>
    %76 = arith.select %2, %74, %75 : vector<16x16xi1>, vector<16x16xf32>
    %cst_30 = arith.constant dense<0.000000e+00> : vector<8x16xf32>
    %77 = tpu.matmul %3, %76, %cst_30 {dimension_numbers = #tpu.dot_dimension_numbers<[1], [0], [0], [1], [0, 0, 1, 1], [], []>} : vector<8x16xf32>, vector<16x16xf32>, vector<8x16xf32> -> vector<8x16xf32>
    %78 = vector.extract_strided_slice %77 {offsets = [0, 0], sizes = [1, 16], strides = [1, 1]} : vector<8x16xf32> to vector<1x16xf32>
    %79 = vector.extract_strided_slice %77 {offsets = [3, 0], sizes = [1, 16], strides = [1, 1]} : vector<8x16xf32> to vector<1x16xf32>
    %cst_31 = arith.constant 0.000000e+00 : f32
    %80 = vector.broadcast %cst_31 : f32 to vector<1x16xf32>
    %81 = arith.cmpf ogt, %78, %80 : vector<1x16xf32>
    %cst_32 = arith.constant 1.000000e+00 : f32
    %82 = vector.broadcast %cst_32 : f32 to vector<1x16xf32>
    %83 = arith.select %81, %78, %82 : vector<1x16xi1>, vector<1x16xf32>
    %84 = tpu.reciprocal %83 {approx = true} : vector<1x16xf32> -> vector<1x16xf32>
    %85 = arith.mulf %79, %84 : vector<1x16xf32>
    %86 = vector.shape_cast %85 : vector<1x16xf32> to vector<1x1x16xf32>
    %cst_33 = arith.constant dense<0.000000e+00> : vector<1xf32>
    %87 = vector.multi_reduction <add>, %86, %cst_33 [1, 2] : vector<1x1x16xf32> to vector<1xf32>
    %88 = vector.shape_cast %87 : vector<1xf32> to vector<1x1x1xf32>
    %89 = vector.extract %88[0, 0, 0] : f32 from vector<1x1x1xf32>
    %90 = arith.addf %61, %89 : f32
    %c0_34 = arith.constant 0 : index
    %c3 = arith.constant 3 : index
    %91 = vector.load %arg1[%c0_34, %c3] : memref<16x4xf32, #tpu.memory_space<vmem>>, vector<16x1xf32>
    %c3_35 = arith.constant 3 : index
    %c0_36 = arith.constant 0 : index
    %92 = vector.load %arg2[%c3_35, %c0_36] : memref<4x16xf32, #tpu.memory_space<vmem>>, vector<1x16xf32>
    %93 = vector.broadcast %91 : vector<16x1xf32> to vector<16x16xf32>
    %94 = vector.broadcast %92 : vector<1x16xf32> to vector<16x16xf32>
    %95 = arith.addf %93, %94 : vector<16x16xf32>
    %cst_37 = arith.constant 0.00999999977 : f32
    %96 = vector.broadcast %cst_37 : f32 to vector<16x16xf32>
    %97 = arith.mulf %96, %95 : vector<16x16xf32>
    %98 = arith.maximumf %95, %97 : vector<16x16xf32>
    %cst_38 = arith.constant dense<0xFF800000> : vector<16xf32>
    %99 = vector.multi_reduction <maximumf>, %98, %cst_38 [0] : vector<16x16xf32> to vector<16xf32>
    %100 = vector.shape_cast %99 : vector<16xf32> to vector<1x16xf32>
    %101 = vector.broadcast %100 : vector<1x16xf32> to vector<16x16xf32>
    %102 = arith.subf %98, %101 : vector<16x16xf32>
    %103 = math.exp %102 : vector<16x16xf32>
    %cst_39 = arith.constant 0.000000e+00 : f32
    %104 = vector.broadcast %cst_39 : f32 to vector<16x16xf32>
    %105 = arith.select %2, %103, %104 : vector<16x16xi1>, vector<16x16xf32>
    %cst_40 = arith.constant dense<0.000000e+00> : vector<8x16xf32>
    %106 = tpu.matmul %3, %105, %cst_40 {dimension_numbers = #tpu.dot_dimension_numbers<[1], [0], [0], [1], [0, 0, 1, 1], [], []>} : vector<8x16xf32>, vector<16x16xf32>, vector<8x16xf32> -> vector<8x16xf32>
    %107 = vector.extract_strided_slice %106 {offsets = [0, 0], sizes = [1, 16], strides = [1, 1]} : vector<8x16xf32> to vector<1x16xf32>
    %108 = vector.extract_strided_slice %106 {offsets = [4, 0], sizes = [1, 16], strides = [1, 1]} : vector<8x16xf32> to vector<1x16xf32>
    %cst_41 = arith.constant 0.000000e+00 : f32
    %109 = vector.broadcast %cst_41 : f32 to vector<1x16xf32>
    %110 = arith.cmpf ogt, %107, %109 : vector<1x16xf32>
    %cst_42 = arith.constant 1.000000e+00 : f32
    %111 = vector.broadcast %cst_42 : f32 to vector<1x16xf32>
    %112 = arith.select %110, %107, %111 : vector<1x16xi1>, vector<1x16xf32>
    %113 = tpu.reciprocal %112 {approx = true} : vector<1x16xf32> -> vector<1x16xf32>
    %114 = arith.mulf %108, %113 : vector<1x16xf32>
    %115 = vector.shape_cast %114 : vector<1x16xf32> to vector<1x1x16xf32>
    %cst_43 = arith.constant dense<0.000000e+00> : vector<1xf32>
    %116 = vector.multi_reduction <add>, %115, %cst_43 [1, 2] : vector<1x1x16xf32> to vector<1xf32>
    %117 = vector.shape_cast %116 : vector<1xf32> to vector<1x1x1xf32>
    %118 = vector.extract %117[0, 0, 0] : f32 from vector<1x1x1xf32>
    %119 = arith.addf %90, %118 : f32
    %120 = vector.broadcast %119 : f32 to vector<1x1x1xf32>
    %c0_44 = arith.constant 0 : index
    %c0_45 = arith.constant 0 : index
    %c0_46 = arith.constant 0 : index
    %121 = vector.load %arg5[%c0_44, %c0_45, %c0_46] : memref<1x1x1xf32, #tpu.memory_space<vmem>>, vector<1x1x1xf32>
    tpu.vector_store %arg5[%c0_44, %c0_45, %c0_46], %120 {strides = array<i32>} : memref<1x1x1xf32, #tpu.memory_space<vmem>>, vector<1x1x1xf32>,
    return
  }
  func.func @transform_0(%arg0: i32) -> (i32, i32) {
    %c0_i32 = arith.constant 0 : i32
    %c0_i32_0 = arith.constant 0 : i32
    %c0_i32_1 = arith.constant 0 : i32
    return %c0_i32, %c0_i32_0 : i32, i32
  }
  func.func @transform_1(%arg0: i32) -> (i32, i32) {
    %c0_i32 = arith.constant 0 : i32
    %c0_i32_0 = arith.constant 0 : i32
    return %c0_i32, %arg0 : i32, i32
  }
  func.func @transform_2(%arg0: i32) -> (i32, i32) {
    %c0_i32 = arith.constant 0 : i32
    %c0_i32_0 = arith.constant 0 : i32
    %c0_i32_1 = arith.constant 0 : i32
    return %c0_i32, %c0_i32_0 : i32, i32
  }
  func.func @transform_3(%arg0: i32) -> (i32, i32) {
    %c0_i32 = arith.constant 0 : i32
    %c0_i32_0 = arith.constant 0 : i32
    return %c0_i32, %arg0 : i32, i32
  }
  func.func @transform_4(%arg0: i32) -> (i32, i32, i32) {
    %c0_i32 = arith.constant 0 : i32
    %c0_i32_0 = arith.constant 0 : i32
    %c0_i32_1 = arith.constant 0 : i32
    return %arg0, %c0_i32, %c0_i32_0 : i32, i32, i32
  }
}

module attributes {stable_mosaic.version = 11 : i64} {
  func.func @_gat_scalar_kernel(%arg0: i32, %arg1: memref<16x4xf32, #tpu.memory_space<vmem>>, %arg2: memref<4x16xf32, #tpu.memory_space<vmem>>, %arg3: memref<8x16xf32, #tpu.memory_space<vmem>>, %arg4: memref<16x16xi8, #tpu.memory_space<vmem>>, %arg5: memref<1x1x1xf32, #tpu.memory_space<vmem>>) attributes {dimension_semantics = [#tpu.dimension_semantics<parallel>], iteration_bounds = array<i64: 1>, scalar_prefetch = 0 : i64, scratch_operands = 0 : i64, tpu.core_type = #tpu.core_type<tc>, window_params = [{pipeline_mode = #tpu.pipeline_mode<synchronous>, transform_indices = @transform_0, window_bounds = array<i64: 16, 4>}, {transform_indices = @transform_1, window_bounds = array<i64: 4, 16>}, {pipeline_mode = #tpu.pipeline_mode<synchronous>, transform_indices = @transform_2, window_bounds = array<i64: 8, 16>}, {transform_indices = @transform_3, window_bounds = array<i64: 16, 16>}, {transform_indices = @transform_4, window_bounds = array<i64: 1, 1, 1>}]} {
    %c0 = arith.constant 0 : index
    %c0_0 = arith.constant 0 : index
    %0 = vector.load %arg4[%c0, %c0_0] : memref<16x16xi8, #tpu.memory_space<vmem>>, vector<16x16xi8>
    %c0_i8 = arith.constant 0 : i8
    %1 = vector.broadcast %c0_i8 : i8 to vector<16x16xi8>
    %2 = arith.cmpi ne, %0, %1 : vector<16x16xi8>
    %c0_1 = arith.constant 0 : index
    %c0_2 = arith.constant 0 : index
    %3 = vector.load %arg3[%c0_1, %c0_2] : memref<8x16xf32, #tpu.memory_space<vmem>>, vector<8x16xf32>
    %c0_3 = arith.constant 0 : index
    %c0_4 = arith.constant 0 : index
    %4 = vector.load %arg1[%c0_3, %c0_4] : memref<16x4xf32, #tpu.memory_space<vmem>>, vector<16x1xf32>
    %c0_5 = arith.constant 0 : index
    %c0_6 = arith.constant 0 : index
    %5 = vector.load %arg2[%c0_5, %c0_6] : memref<4x16xf32, #tpu.memory_space<vmem>>, vector<1x16xf32>
    %6 = vector.broadcast %4 : vector<16x1xf32> to vector<16x16xf32>
    %7 = vector.broadcast %5 : vector<1x16xf32> to vector<16x16xf32>
    %8 = arith.addf %6, %7 : vector<16x16xf32>
    %cst = arith.constant 0.00999999977 : f32
    %9 = vector.broadcast %cst : f32 to vector<16x16xf32>
    %10 = arith.mulf %9, %8 : vector<16x16xf32>
    %11 = arith.maximumf %8, %10 : vector<16x16xf32>
    %cst_7 = arith.constant dense<0xFF800000> : vector<16xf32>
    %12 = vector.multi_reduction <maximumf>, %11, %cst_7 [0] : vector<16x16xf32> to vector<16xf32>
    %13 = vector.shape_cast %12 : vector<16xf32> to vector<1x16xf32>
    %14 = vector.broadcast %13 : vector<1x16xf32> to vector<16x16xf32>
    %15 = arith.subf %11, %14 : vector<16x16xf32>
    %16 = math.exp %15 : vector<16x16xf32>
    %cst_8 = arith.constant 0.000000e+00 : f32
    %17 = vector.broadcast %cst_8 : f32 to vector<16x16xf32>
    %18 = arith.select %2, %16, %17 : vector<16x16xi1>, vector<16x16xf32>
    %cst_9 = arith.constant dense<0.000000e+00> : vector<8x16xf32>
    %19 = tpu.matmul %3, %18, %cst_9 {dimension_numbers = #tpu.dot_dimension_numbers<[1], [0], [0], [1], [0, 0, 1, 1], [], []>} : vector<8x16xf32>, vector<16x16xf32>, vector<8x16xf32> -> vector<8x16xf32>
    %20 = vector.extract_strided_slice %19 {offsets = [0, 0], sizes = [1, 16], strides = [1, 1]} : vector<8x16xf32> to vector<1x16xf32>
    %21 = vector.extract_strided_slice %19 {offsets = [1, 0], sizes = [1, 16], strides = [1, 1]} : vector<8x16xf32> to vector<1x16xf32>
    %cst_10 = arith.constant 0.000000e+00 : f32
    %22 = vector.broadcast %cst_10 : f32 to vector<1x16xf32>
    %23 = arith.cmpf ogt, %20, %22 : vector<1x16xf32>
    %cst_11 = arith.constant 1.000000e+00 : f32
    %24 = vector.broadcast %cst_11 : f32 to vector<1x16xf32>
    %25 = arith.select %23, %20, %24 : vector<1x16xi1>, vector<1x16xf32>
    %26 = tpu.reciprocal %25 {approx = true} : vector<1x16xf32> -> vector<1x16xf32>
    %27 = arith.mulf %21, %26 : vector<1x16xf32>
    %28 = vector.shape_cast %27 : vector<1x16xf32> to vector<1x1x16xf32>
    %cst_12 = arith.constant dense<0.000000e+00> : vector<1xf32>
    %29 = vector.multi_reduction <add>, %28, %cst_12 [1, 2] : vector<1x1x16xf32> to vector<1xf32>
    %30 = vector.shape_cast %29 : vector<1xf32> to vector<1x1x1xf32>
    %31 = vector.extract %30[0, 0, 0] : f32 from vector<1x1x1xf32>
    %cst_13 = arith.constant 0.000000e+00 : f32
    %32 = arith.addf %cst_13, %31 : f32
    %c0_14 = arith.constant 0 : index
    %c1 = arith.constant 1 : index
    %33 = vector.load %arg1[%c0_14, %c1] : memref<16x4xf32, #tpu.memory_space<vmem>>, vector<16x1xf32>
    %c1_15 = arith.constant 1 : index
    %c0_16 = arith.constant 0 : index
    %34 = vector.load %arg2[%c1_15, %c0_16] : memref<4x16xf32, #tpu.memory_space<vmem>>, vector<1x16xf32>
    %35 = vector.broadcast %33 : vector<16x1xf32> to vector<16x16xf32>
    %36 = vector.broadcast %34 : vector<1x16xf32> to vector<16x16xf32>
    %37 = arith.addf %35, %36 : vector<16x16xf32>
    %cst_17 = arith.constant 0.00999999977 : f32
    %38 = vector.broadcast %cst_17 : f32 to vector<16x16xf32>
    %39 = arith.mulf %38, %37 : vector<16x16xf32>
    %40 = arith.maximumf %37, %39 : vector<16x16xf32>
    %cst_18 = arith.constant dense<0xFF800000> : vector<16xf32>
    %41 = vector.multi_reduction <maximumf>, %40, %cst_18 [0] : vector<16x16xf32> to vector<16xf32>
    %42 = vector.shape_cast %41 : vector<16xf32> to vector<1x16xf32>
    %43 = vector.broadcast %42 : vector<1x16xf32> to vector<16x16xf32>
    %44 = arith.subf %40, %43 : vector<16x16xf32>
    %45 = math.exp %44 : vector<16x16xf32>
    %cst_19 = arith.constant 0.000000e+00 : f32
    %46 = vector.broadcast %cst_19 : f32 to vector<16x16xf32>
    %47 = arith.select %2, %45, %46 : vector<16x16xi1>, vector<16x16xf32>
    %cst_20 = arith.constant dense<0.000000e+00> : vector<8x16xf32>
    %48 = tpu.matmul %3, %47, %cst_20 {dimension_numbers = #tpu.dot_dimension_numbers<[1], [0], [0], [1], [0, 0, 1, 1], [], []>} : vector<8x16xf32>, vector<16x16xf32>, vector<8x16xf32> -> vector<8x16xf32>
    %49 = vector.extract_strided_slice %48 {offsets = [0, 0], sizes = [1, 16], strides = [1, 1]} : vector<8x16xf32> to vector<1x16xf32>
    %50 = vector.extract_strided_slice %48 {offsets = [2, 0], sizes = [1, 16], strides = [1, 1]} : vector<8x16xf32> to vector<1x16xf32>
    %cst_21 = arith.constant 0.000000e+00 : f32
    %51 = vector.broadcast %cst_21 : f32 to vector<1x16xf32>
    %52 = arith.cmpf ogt, %49, %51 : vector<1x16xf32>
    %cst_22 = arith.constant 1.000000e+00 : f32
    %53 = vector.broadcast %cst_22 : f32 to vector<1x16xf32>
    %54 = arith.select %52, %49, %53 : vector<1x16xi1>, vector<1x16xf32>
    %55 = tpu.reciprocal %54 {approx = true} : vector<1x16xf32> -> vector<1x16xf32>
    %56 = arith.mulf %50, %55 : vector<1x16xf32>
    %57 = vector.shape_cast %56 : vector<1x16xf32> to vector<1x1x16xf32>
    %cst_23 = arith.constant dense<0.000000e+00> : vector<1xf32>
    %58 = vector.multi_reduction <add>, %57, %cst_23 [1, 2] : vector<1x1x16xf32> to vector<1xf32>
    %59 = vector.shape_cast %58 : vector<1xf32> to vector<1x1x1xf32>
    %60 = vector.extract %59[0, 0, 0] : f32 from vector<1x1x1xf32>
    %61 = arith.addf %32, %60 : f32
    %c0_24 = arith.constant 0 : index
    %c2 = arith.constant 2 : index
    %62 = vector.load %arg1[%c0_24, %c2] : memref<16x4xf32, #tpu.memory_space<vmem>>, vector<16x1xf32>
    %c2_25 = arith.constant 2 : index
    %c0_26 = arith.constant 0 : index
    %63 = vector.load %arg2[%c2_25, %c0_26] : memref<4x16xf32, #tpu.memory_space<vmem>>, vector<1x16xf32>
    %64 = vector.broadcast %62 : vector<16x1xf32> to vector<16x16xf32>
    %65 = vector.broadcast %63 : vector<1x16xf32> to vector<16x16xf32>
    %66 = arith.addf %64, %65 : vector<16x16xf32>
    %cst_27 = arith.constant 0.00999999977 : f32
    %67 = vector.broadcast %cst_27 : f32 to vector<16x16xf32>
    %68 = arith.mulf %67, %66 : vector<16x16xf32>
    %69 = arith.maximumf %66, %68 : vector<16x16xf32>
    %cst_28 = arith.constant dense<0xFF800000> : vector<16xf32>
    %70 = vector.multi_reduction <maximumf>, %69, %cst_28 [0] : vector<16x16xf32> to vector<16xf32>
    %71 = vector.shape_cast %70 : vector<16xf32> to vector<1x16xf32>
    %72 = vector.broadcast %71 : vector<1x16xf32> to vector<16x16xf32>
    %73 = arith.subf %69, %72 : vector<16x16xf32>
    %74 = math.exp %73 : vector<16x16xf32>
    %cst_29 = arith.constant 0.000000e+00 : f32
    %75 = vector.broadcast %cst_29 : f32 to vector<16x16xf32>
    %76 = arith.select %2, %74, %75 : vector<16x16xi1>, vector<16x16xf32>
    %cst_30 = arith.constant dense<0.000000e+00> : vector<8x16xf32>
    %77 = tpu.matmul %3, %76, %cst_30 {dimension_numbers = #tpu.dot_dimension_numbers<[1], [0], [0], [1], [0, 0, 1, 1], [], []>} : vector<8x16xf32>, vector<16x16xf32>, vector<8x16xf32> -> vector<8x16xf32>
    %78 = vector.extract_strided_slice %77 {offsets = [0, 0], sizes = [1, 16], strides = [1, 1]} : vector<8x16xf32> to vector<1x16xf32>
    %79 = vector.extract_strided_slice %77 {offsets = [3, 0], sizes = [1, 16], strides = [1, 1]} : vector<8x16xf32> to vector<1x16xf32>
    %cst_31 = arith.constant 0.000000e+00 : f32
    %80 = vector.broadcast %cst_31 : f32 to vector<1x16xf32>
    %81 = arith.cmpf ogt, %78, %80 : vector<1x16xf32>
    %cst_32 = arith.constant 1.000000e+00 : f32
    %82 = vector.broadcast %cst_32 : f32 to vector<1x16xf32>
    %83 = arith.select %81, %78, %82 : vector<1x16xi1>, vector<1x16xf32>
    %84 = tpu.reciprocal %83 {approx = true} : vector<1x16xf32> -> vector<1x16xf32>
    %85 = arith.mulf %79, %84 : vector<1x16xf32>
    %86 = vector.shape_cast %85 : vector<1x16xf32> to vector<1x1x16xf32>
    %cst_33 = arith.constant dense<0.000000e+00> : vector<1xf32>
    %87 = vector.multi_reduction <add>, %86, %cst_33 [1, 2] : vector<1x1x16xf32> to vector<1xf32>
    %88 = vector.shape_cast %87 : vector<1xf32> to vector<1x1x1xf32>
    %89 = vector.extract %88[0, 0, 0] : f32 from vector<1x1x1xf32>
    %90 = arith.addf %61, %89 : f32
    %c0_34 = arith.constant 0 : index
    %c3 = arith.constant 3 : index
    %91 = vector.load %arg1[%c0_34, %c3] : memref<16x4xf32, #tpu.memory_space<vmem>>, vector<16x1xf32>
    %c3_35 = arith.constant 3 : index
    %c0_36 = arith.constant 0 : index
    %92 = vector.load %arg2[%c3_35, %c0_36] : memref<4x16xf32, #tpu.memory_space<vmem>>, vector<1x16xf32>
    %93 = vector.broadcast %91 : vector<16x1xf32> to vector<16x16xf32>
    %94 = vector.broadcast %92 : vector<1x16xf32> to vector<16x16xf32>
    %95 = arith.addf %93, %94 : vector<16x16xf32>
    %cst_37 = arith.constant 0.00999999977 : f32
    %96 = vector.broadcast %cst_37 : f32 to vector<16x16xf32>
    %97 = arith.mulf %96, %95 : vector<16x16xf32>
    %98 = arith.maximumf %95, %97 : vector<16x16xf32>
    %cst_38 = arith.constant dense<0xFF800000> : vector<16xf32>
    %99 = vector.multi_reduction <maximumf>, %98, %cst_38 [0] : vector<16x16xf32> to vector<16xf32>
    %100 = vector.shape_cast %99 : vector<16xf32> to vector<1x16xf32>
    %101 = vector.broadcast %100 : vector<1x16xf32> to vector<16x16xf32>
    %102 = arith.subf %98, %101 : vector<16x16xf32>
    %103 = math.exp %102 : vector<16x16xf32>
    %cst_39 = arith.constant 0.000000e+00 : f32
    %104 = vector.broadcast %cst_39 : f32 to vector<16x16xf32>
    %105 = arith.select %2, %103, %104 : vector<16x16xi1>, vector<16x16xf32>
    %cst_40 = arith.constant dense<0.000000e+00> : vector<8x16xf32>
    %106 = tpu.matmul %3, %105, %cst_40 {dimension_numbers = #tpu.dot_dimension_numbers<[1], [0], [0], [1], [0, 0, 1, 1], [], []>} : vector<8x16xf32>, vector<16x16xf32>, vector<8x16xf32> -> vector<8x16xf32>
    %107 = vector.extract_strided_slice %106 {offsets = [0, 0], sizes = [1, 16], strides = [1, 1]} : vector<8x16xf32> to vector<1x16xf32>
    %108 = vector.extract_strided_slice %106 {offsets = [4, 0], sizes = [1, 16], strides = [1, 1]} : vector<8x16xf32> to vector<1x16xf32>
    %cst_41 = arith.constant 0.000000e+00 : f32
    %109 = vector.broadcast %cst_41 : f32 to vector<1x16xf32>
    %110 = arith.cmpf ogt, %107, %109 : vector<1x16xf32>
    %cst_42 = arith.constant 1.000000e+00 : f32
    %111 = vector.broadcast %cst_42 : f32 to vector<1x16xf32>
    %112 = arith.select %110, %107, %111 : vector<1x16xi1>, vector<1x16xf32>
    %113 = tpu.reciprocal %112 {approx = true} : vector<1x16xf32> -> vector<1x16xf32>
    %114 = arith.mulf %108, %113 : vector<1x16xf32>
    %115 = vector.shape_cast %114 : vector<1x16xf32> to vector<1x1x16xf32>
    %cst_43 = arith.constant dense<0.000000e+00> : vector<1xf32>
    %116 = vector.multi_reduction <add>, %115, %cst_43 [1, 2] : vector<1x1x16xf32> to vector<1xf32>
    %117 = vector.shape_cast %116 : vector<1xf32> to vector<1x1x1xf32>
    %118 = vector.extract %117[0, 0, 0] : f32 from vector<1x1x1xf32>
    %119 = arith.addf %90, %118 : f32
    %120 = vector.broadcast %119 : f32 to vector<1x1x1xf32>
    %c0_44 = arith.constant 0 : index
    %c0_45 = arith.constant 0 : index
    %c0_46 = arith.constant 0 : index
    %121 = vector.load %arg5[%c0_44, %c0_45, %c0_46] : memref<1x1x1xf32, #tpu.memory_space<vmem>>, vector<1x1x1xf32>
    tpu.vector_store %arg5[%c0_44, %c0_45, %c0_46], %120 {strides = array<i32>} : memref<1x1x1xf32, #tpu.memory_space<vmem>>, vector<1x1x1xf32>,
    return
  }
  func.func @transform_0(%arg0: i32) -> (i32, i32) {
    %c0_i32 = arith.constant 0 : i32
    %c0_i32_0 = arith.constant 0 : i32
    %c0_i32_1 = arith.constant 0 : i32
    return %c0_i32, %c0_i32_0 : i32, i32
  }
  func.func @transform_1(%arg0: i32) -> (i32, i32) {
    %c0_i32 = arith.constant 0 : i32
    %c0_i32_0 = arith.constant 0 : i32
    return %c0_i32, %arg0 : i32, i32
  }
  func.func @transform_2(%arg0: i32) -> (i32, i32) {
    %c0_i32 = arith.constant 0 : i32
    %c0_i32_0 = arith.constant 0 : i32
    %c0_i32_1 = arith.constant 0 : i32
    return %c0_i32, %c0_i32_0 : i32, i32
  }
  func.func @transform_3(%arg0: i32) -> (i32, i32) {
    %c0_i32 = arith.constant 0 : i32
    %c0_i32_0 = arith.constant 0 : i32
    return %c0_i32, %arg0 : i32, i32
  }
  func.func @transform_4(%arg0: i32) -> (i32, i32, i32) {
    %c0_i32 = arith.constant 0 : i32
    %c0_i32_0 = arith.constant 0 : i32
    %c0_i32_1 = arith.constant 0 : i32
    return %arg0, %c0_i32, %c0_i32_0 : i32, i32, i32
  }
}

</mosaic_0001>

<bundles_post_ra>
// kernel: tpu_custom_call.1
= control target key start
LH: loop header
LB: loop body
LE: loop exit
PB: predicated region body
PF: predicated region fallthrough
CT: control target
= control target key end

     0   :  { %v707_v0 = vmov 1   ;;  %v708_v1 = vmov 0   ;;  %s830_s0 = inlined_call_operand.vmem [shape: f32[16,4], index: 0, kind: input, shape index: {}]   ;;  %s831_s1 = inlined_call_operand.vmem [shape: f32[4,16], index: 1, kind: input, shape index: {}]   ;;  %s832_s2 = inlined_call_operand.vmem [shape: f32[8,16], index: 2, kind: input, shape index: {}]   ;;  %s833_s3 = inlined_call_operand.vmem [shape: s8[16,16], index: 3, kind: input, shape index: {}]   ;;  %s834_s4 = inlined_call_operand.hbm [shape: f32[1,1,1], index: 4, kind: output, shape index: {}]  }
   0x1   :  { %654 = vset.pattern.permute.xlu1 %v707_v0  ;;  %653 = vset.pattern.permute.xlu0 %v708_v1  ;;  %v25_v2 = vld [vmem:[%s830_s0] sm:$0xff]  ;;  %v26_v3 = vld [vmem:[%s830_s0 + $0x8] sm:$0xff] }
   0x2   :  { %169 = vperm.xlu1 %654, %v25_v2   ;;  %30 = vperm.xlu0 %653, %v25_v2  }
   0x3   :  { %9 = vsyncpa [#allocation3], 0  ;;  %v709_v4 = vmov 2   ;;  %v710_v5 = vmov 3   ;;  %v711_v6 = vmov 0.0|0.0   ;;  %vm712_vm0 = vmmov 0  }
   0x4   :  { %621 = vmatprep.subr.bf16.mxu0 %v711_v6  ;;  %625 = vmatprep.subr.bf16.mxu1 %v711_v6  ;;  %v713_v7 = vmov 0.0   ;;  %v569_v8 = vld [vmem:[%s831_s1 + $0x1] ss:$0 sm:$0xff]  ;;  %v565_v9 = vld [vmem:[%s831_s1] ss:$0 sm:$0xff]  ;;  %vm48_vm1 = vcmask 130048  }
   0x5   :  { %597 = vmatprep.mubr.msk.f32.mxu0 %vm712_vm0, %v713_v7  ;;  %604 = vmatprep.mubr.msk.f32.mxu1 %vm712_vm0, %v713_v7  ;;  %v573_v24 = vld [vmem:[%s831_s1 + $0x2] ss:$0 sm:$0xff]  ;;  %v577_v39 = vld [vmem:[%s831_s1 + $0x3] ss:$0 sm:$0xff]  ;;  %vm155_vm11 = vcmask 122880   ;;  %s714_s8 = smov [#allocation2]  }
   0x6   :  { %173 = vperm.xlu1 %654, %v26_v3   ;;  %35 = vperm.xlu0 %653, %v26_v3   ;;  %s557_s9 = sshll.u32 %s714_s8, 4  ;;  %vm549_vm12 = vcmask 0   ;;  %s558_s9 = int_to_ptr.vmem [resolvable:$true] %s557_s9 }
   0x7   :  { %s683_s12 = scalar_lea.vmem %s558_s9, 16  ;;  %s687_s13 = scalar_lea.vmem %s558_s9, 32 }
   0x8   :  { %p684_p0 = scmp.ne.s32.totalorder %s558_s9, %s683_s12  ;;  %p688_p1 = scmp.lt.s32.totalorder %s558_s9, %s558_s9 }
   0x9   :  { %p689_p2 = scmp.lt.s32.totalorder %s687_s13, %s683_s12 }
   0xa   :  { %656 = vset.pattern.permute.xlu1 %v709_v4  ;;  %655 = vset.pattern.permute.xlu0 %v709_v4 }
   0xb   :  { %300 = vperm.xlu1 %656, %v26_v3   ;;  %296 = vperm.xlu0 %655, %v25_v2   ;;  %p690_p3 = por %p689_p2, %p688_p1 }
   0xd   :  { %p691_p4 = pnand %p690_p3, %p684_p0 }
   0xf   :  { %657 = vset.pattern.permute.xlu1 %v710_v5  ;;  %658 = vset.pattern.permute.xlu0 %v710_v5 }
  0x10   :  { %423 = vperm.xlu1 %657, %v25_v2   ;;  %427 = vperm.xlu0 %658, %v26_v3  }
  0x81   :  { %v170_v10 = vpop.permute.xlu1 %169  ;;  %v31_v11 = vpop.permute.xlu0 %30 }
  0x82   :  { %v180_v12 = vadd.f32 %v569_v8, %v170_v10  ;;  %v42_v13 = vadd.f32 %v565_v9, %v31_v11 }
  0x84   :  { %v182_v14 = vmul.f32 0.01, %v180_v12  ;;  %v44_v15 = vmul.f32 0.01, %v42_v13 }
  0x85   :  { %v174_v16 = vpop.permute.xlu1 %173  ;;  %v36_v17 = vpop.permute.xlu0 %35 }
  0x86   :  { %v181_v18 = vadd.f32 %v569_v8, %v174_v16  ;;  %v43_v19 = vadd.f32 %v565_v9, %v36_v17  ;;  %v759_v20 = vmax.f32 %v180_v12, %v182_v14  ;;  %v761_v21 = vmax.f32 %v42_v13, %v44_v15  ;;  %v20_v8 = vld [vmem:[%s833_s3] sm:$0x3]  ;;  %v21_v9 = vld [vmem:[%s833_s3 + $0x2] sm:$0x3] }
  0x87   :  { %vm22_vm2 = vnez %v20_v8  ;;  %vm23_vm3 = vnez %v21_v9 }
  0x88   :  { %v183_v22 = vmul.f32 0.01, %v181_v18  ;;  %v45_v23 = vmul.f32 0.01, %v43_v19  ;;  %v186_v31 = vsel %vm48_vm1, %v759_v20, -inf  ;;  %v49_v32 = vsel %vm48_vm1, %v761_v21, -inf }
  0x8a   :  { %v185_v25 = vmax.f32 %v181_v18, %v183_v22  ;;  %v47_v26 = vmax.f32 %v43_v19, %v45_v23  ;;  %v301_v27 = vpop.permute.xlu1 %300  ;;  %v297_v28 = vpop.permute.xlu0 %296 }
  0x8b   :  { %v308_v29 = vadd.f32 %v573_v24, %v301_v27  ;;  %v307_v30 = vadd.f32 %v573_v24, %v297_v28 }
  0x8c   :  { %v187_v33 = vsel %vm48_vm1, %v185_v25, -inf  ;;  %v50_v34 = vsel %vm48_vm1, %v47_v26, -inf }
  0x8d   :  { %v188_v35 = vmax.f32 %v186_v31, %v187_v33  ;;  %v51_v36 = vmax.f32 %v49_v32, %v50_v34  ;;  %v310_v37 = vmul.f32 0.01, %v308_v29  ;;  %v309_v38 = vmul.f32 0.01, %v307_v30 }
  0x8e   :  { %v65_v31 = vsel %vm23_vm3, 16843009, %v708_v1 }
  0x8f   :  { %v189_v40 = vrot.slane %v188_v35, 4  ;;  %v52_v41 = vrot.slane %v51_v36, 4  ;;  %v312_v42 = vmax.f32 %v308_v29, %v310_v37  ;;  %v311_v43 = vmax.f32 %v307_v30, %v309_v38  ;;  %v424_v44 = vpop.permute.xlu1 %423  ;;  %v428_v45 = vpop.permute.xlu0 %427 }
  0x90   :  { %v434_v46 = vadd.f32 %v577_v39, %v424_v44  ;;  %v435_v47 = vadd.f32 %v577_v39, %v428_v45  ;;  %v64_v30 = vsel %vm22_vm2, 16843009, %v708_v1 }
  0x91   :  { %v190_v48 = vmax.f32 %v188_v35, %v189_v40  ;;  %v53_v49 = vmax.f32 %v51_v36, %v52_v41  ;;  %v314_v50 = vsel %vm48_vm1, %v312_v42, -inf  ;;  %v313_v51 = vsel %vm48_vm1, %v311_v43, -inf }
  0x92   :  { %v315_v52 = vmax.f32 %v313_v51, %v314_v50  ;;  %v436_v53 = vmul.f32 0.01, %v434_v46  ;;  %v437_v54 = vmul.f32 0.01, %v435_v47  ;;  %v66_v34 = vunpack.c.0.s8 %v64_v30 }
  0x93   :  { %v191_v55 = vrot.slane %v190_v48, 2  ;;  %v54_v56 = vrot.slane %v53_v49, 2  ;;  %v67_v35 = vunpack.c.0.s8 %v65_v31 }
  0x94   :  { %v316_v57 = vrot.slane %v315_v52, 4  ;;  %v438_v58 = vmax.f32 %v434_v46, %v436_v53  ;;  %v439_v59 = vmax.f32 %v435_v47, %v437_v54  ;;  %vm68_vm4 = vcmp.ne.s32.totalorder %v66_v34, 0  ;;  %v24_v47 = vld [vmem:[%s832_s2] sm:$0xff] }
  0x95   :  { %v192_v60 = vmax.f32 %v190_v48, %v191_v55  ;;  %v55_v61 = vmax.f32 %v53_v49, %v54_v56  ;;  %vm69_vm5 = vcmp.ne.s32.totalorder %v67_v35, 0 }
  0x96   :  { %v317_v62 = vmax.f32 %v315_v52, %v316_v57  ;;  %v440_v63 = vsel %vm48_vm1, %v438_v58, -inf  ;;  %v441_v0 = vsel %vm48_vm1, %v439_v59, -inf  ;;  %vm789_vm6 = vmpackc.low %vm69_vm5, %vm68_vm4 }
  0x97   :  { %v193_v2 = vrot.slane %v192_v60, 1  ;;  %v56_v3 = vrot.slane %v55_v61, 1  ;;  %v442_v4 = vmax.f32 %v440_v63, %v441_v0 }
  0x98   :  { %v318_v5 = vrot.slane %v317_v62, 2 }
  0x99   :  { %v194_v10 = vmax.f32 %v192_v60, %v193_v2  ;;  %v57_v11 = vmax.f32 %v55_v61, %v56_v3  ;;  %v443_v12 = vrot.slane %v442_v4, 4 }
  0x9a   :  { %v319_v13 = vmax.f32 %v317_v62, %v318_v5 }
  0x9b   :  { %v195_v14 = vsub.f32 %v759_v20, %v194_v10  ;;  %v196_v15 = vsub.f32 %v185_v25, %v194_v10  ;;  %v58_v16 = vsub.f32 %v761_v21, %v57_v11  ;;  %v59_v17 = vsub.f32 %v47_v26, %v57_v11 }
  0x9c   :  { %v320_v18 = vrot.slane %v319_v13, 1  ;;  %v444_v19 = vmax.f32 %v442_v4, %v443_v12 }
  0x9d   :  { %v197_v22 = vmul.f32 1.442695, %v195_v14  ;;  %v199_v23 = vmul.f32 1.442695, %v196_v15  ;;  %v60_v24 = vmul.f32 1.442695, %v58_v16 }
  0x9e   :  { %v62_v27 = vmul.f32 1.442695, %v59_v17  ;;  %v321_v28 = vmax.f32 %v319_v13, %v320_v18  ;;  %v445_v29 = vrot.slane %v444_v19, 2 }
  0x9f   :  { %659 = vpow2.f32 %v197_v22 }
  0xa0   :  { %661 = vpow2.f32 %v199_v23  ;;  %v322_v20 = vsub.f32 %v311_v43, %v321_v28  ;;  %v323_v25 = vsub.f32 %v312_v42, %v321_v28  ;;  %v446_v21 = vmax.f32 %v444_v19, %v445_v29 }
  0xa1   :  { %663 = vpow2.f32 %v60_v24 }
  0xa2   :  { %665 = vpow2.f32 %v62_v27  ;;  %v324_v26 = vmul.f32 1.442695, %v322_v20  ;;  %v326_v32 = vmul.f32 1.442695, %v323_v25  ;;  %v447_v33 = vrot.slane %v446_v21, 1 }
  0xa4   :  { %667 = vpow2.f32 %v324_v26  ;;  %v448_v36 = vmax.f32 %v446_v21, %v447_v33 }
  0xa5   :  { %669 = vpow2.f32 %v326_v32 }
  0xa6   :  { %v449_v37 = vsub.f32 %v438_v58, %v448_v36  ;;  %v450_v38 = vsub.f32 %v439_v59, %v448_v36 }
  0xa8   :  { %v451_v1 = vmul.f32 1.442695, %v449_v37  ;;  %v453_v39 = vmul.f32 1.442695, %v450_v38 }
  0xa9   :  { %v660_v40 = vpop.eup %659 }
  0xaa   :  { %v662_v41 = vpop.eup %661  ;;  %671 = vpow2.f32 %v451_v1 }
  0xab   :  { %v664_v43 = vpop.eup %663  ;;  %673 = vpow2.f32 %v453_v39  ;;  %v626_v44 = vpack.c.bf16 %v662_v41, %v660_v40 }
  0xac   :  { %v666_v45 = vpop.eup %665 }
  0xad   :  { %v622_v46 = vpack.c.bf16 %v666_v45, %v664_v43  ;;  %628 = vmatpush3.bf16.msk.msra.mxu1 %vm789_vm6, %v626_v44 }
  0xae   :  { %v668_v48 = vpop.eup %667  ;;  %633 = vmatprep.subr.bf16.mxu1 %v711_v6 }
  0xaf   :  { %v670_v49 = vpop.eup %669  ;;  %624 = vmatpush3.bf16.msk.msra.mxu0 %vm789_vm6, %v622_v46 }
  0xb0   :  { %605 = vmatmul.mubr.msk.f32.vlgmr.msra.gmra.mrb[0].mxu1 %vm48_vm1, %v24_v47  ;;  %629 = vmatprep.subr.bf16.mxu0 %v711_v6  ;;  %v630_v50 = vpack.c.bf16 %v670_v49, %v668_v48 }
  0xb1   :  { %618 = vmatprep.mubr.msk.f32.mxu1 %vm712_vm0, %v713_v7 }
  0xb2   :  { %598 = vmatmul.mubr.msk.f32.vlgmr.msra.gmra.mrb[0].mxu0 %vm48_vm1, %v24_v47 }
  0xb3   :  { %632 = vmatpush3.bf16.msk.msra.mxu0 %vm789_vm6, %v630_v50  ;;  %611 = vmatprep.mubr.msk.f32.mxu0 %vm712_vm0, %v713_v7 }
  0xb4   :  { %v672_v51 = vpop.eup %671 }
  0xb5   :  { %v674_v52 = vpop.eup %673 }
  0xb6   :  { %612 = vmatmul.mubr.msk.f32.vlgmr.msra.gmra.mrb[2].mxu0 %vm48_vm1, %v24_v47  ;;  %v634_v53 = vpack.c.bf16 %v674_v52, %v672_v51 }
  0xb8   :  { %636 = vmatpush3.bf16.msk.msra.mxu1 %vm789_vm6, %v634_v53 }
  0xbb   :  { %619 = vmatmul.mubr.msk.f32.vlgmr.msra.gmra.mrb[2].mxu1 %vm48_vm1, %v24_v47 }
 0x183   :  { %v269_v6 = vpop.f32.mrb[0].mxu1 }
 0x184   :  { %vm273_vm7 = vcmp.gt.f32.partialorder %v269_v6, 0.0  ;;  %v606_v54 = vpop.f32.mrb[1].mxu1 }
 0x185   :  { %v141_v55 = vpop.f32.mrb[0].mxu0  ;;  %v274_v56 = vsel %vm273_vm7, %v269_v6, 1.0 }
 0x186   :  { %vm145_vm8 = vcmp.gt.f32.partialorder %v141_v55, 0.0  ;;  %675 = vrcp.f32 %v274_v56  ;;  %v599_v57 = vpop.f32.mrb[1].mxu0 }
 0x187   :  { %v146_v58 = vsel %vm145_vm8, %v141_v55, 1.0 }
 0x188   :  { %677 = vrcp.f32 %v146_v58 }
 0x189   :  { %v396_v7 = vpop.f32.mrb[2].mxu0 }
 0x18a   :  { %vm400_vm9 = vcmp.gt.f32.partialorder %v396_v7, 0.0  ;;  %v613_v59 = vpop.f32.mrb[3].mxu0 }
 0x18b   :  { %v401_v60 = vsel %vm400_vm9, %v396_v7, 1.0 }
 0x18c   :  { %679 = vrcp.f32 %v401_v60 }
 0x18e   :  { %v523_v61 = vpop.f32.mrb[2].mxu1 }
 0x18f   :  { %vm527_vm10 = vcmp.gt.f32.partialorder %v523_v61, 0.0  ;;  %v620_v62 = vpop.f32.mrb[3].mxu1 }
 0x190   :  { %v676_v63 = vpop.eup %675  ;;  %v528_v0 = vsel %vm527_vm10, %v523_v61, 1.0 }
 0x191   :  { %681 = vrcp.f32 %v528_v0  ;;  %v277_v2 = vrot.slane %v676_v63, 6 }
 0x192   :  { %v678_v3 = vpop.eup %677 }
 0x193   :  { %v279_v4 = vmul.f32 %v277_v2, %v269_v6  ;;  %v149_v5 = vrot.slane %v678_v3, 7 }
 0x195   :  { %v281_v8 = vrot.slane %v279_v4, 2  ;;  %v151_v9 = vmul.f32 %v149_v5, %v141_v55 }
 0x196   :  { %v680_v10 = vpop.eup %679 }
 0x197   :  { %v283_v11 = vsel %vm155_vm11, %v281_v8, 0.0  ;;  %v153_v12 = vrot.slane %v151_v9, 1  ;;  %v404_v13 = vrot.slane %v680_v10, 5 }
 0x198   :  { %284 = vadd.xlane.f32.xlu0 %v283_v11 }
 0x199   :  { %v156_v14 = vsel %vm155_vm11, %v153_v12, 0.0  ;;  %v406_v15 = vmul.f32 %v404_v13, %v396_v7 }
 0x19a   :  { %157 = vadd.xlane.f32.xlu1 %v156_v14 }
 0x19b   :  { %v682_v16 = vpop.eup %681  ;;  %v408_v17 = vrot.slane %v406_v15, 3 }
 0x19c   :  { %v531_v18 = vrot.slane %v682_v16, 4 }
 0x19d   :  { %v410_v19 = vsel %vm155_vm11, %v408_v17, 0.0 }
 0x19e   :  { %411 = vadd.xlane.f32.xlu1 %v410_v19  ;;  %v533_v22 = vmul.f32 %v531_v18, %v523_v61 }
 0x1a0   :  { %v535_v23 = vrot.slane %v533_v22, 4 }
 0x1a2   :  { %v537_v24 = vsel %vm155_vm11, %v535_v23, 0.0 }
 0x1a3   :  { %538 = vadd.xlane.f32.xlu0 %v537_v24 }
 0x225   :  { %v285_v27 = vpop.xlane.xlu0 %284 }
 0x226   :  { %v286_v28 = vrot.slane %v285_v27, 4 }
 0x227   :  { %v158_v29 = vpop.xlane.xlu1 %157 }
 0x228   :  { %v287_v30 = vadd.f32 %v286_v28, %v285_v27  ;;  %v159_v31 = vrot.slane %v158_v29, 4 }
 0x22a   :  { %v288_v20 = vrot.slane %v287_v30, 2  ;;  %v160_v25 = vadd.f32 %v159_v31, %v158_v29 }
 0x22b   :  { %v412_v21 = vpop.xlane.xlu1 %411 }
 0x22c   :  { %v161_v26 = vrot.slane %v160_v25, 2  ;;  %v413_v32 = vrot.slane %v412_v21, 4  ;;  %v289_v33 = vadd.f32 %v288_v20, %v287_v30 }
 0x22e   :  { %v414_v34 = vadd.f32 %v413_v32, %v412_v21  ;;  %v162_v35 = vadd.f32 %v161_v26, %v160_v25  ;;  %v290_v36 = vrot.slane %v289_v33, 1 }
 0x230   :  { %v415_v37 = vrot.slane %v414_v34, 2  ;;  %v539_v38 = vpop.xlane.xlu0 %538  ;;  %v163_v1 = vrot.slane %v162_v35, 1  ;;  %v291_v40 = vadd.f32 %v290_v36, %v289_v33 }
 0x231   :  { %v540_v39 = vrot.slane %v539_v38, 4 }
 0x232   :  { %v416_v41 = vadd.f32 %v415_v37, %v414_v34  ;;  %v164_v42 = vadd.f32 %v163_v1, %v162_v35 }
 0x233   :  { %v541_v43 = vadd.f32 %v540_v39, %v539_v38 }
 0x234   :  { %637 = vpush %v164_v42  ;;  %v417_v44 = vrot.slane %v416_v41, 1 }
 0x235   :  { %v542_v45 = vrot.slane %v541_v43, 2  ;;  %639 = vpush %v291_v40 }
 0x236   :  { %v418_v46 = vadd.f32 %v417_v44, %v416_v41 }
 0x237   :  { %v543_v47 = vadd.f32 %v542_v45, %v541_v43 }
 0x238   :  { %641 = vpush %v418_v46 }
 0x239   :  { %v544_v48 = vrot.slane %v543_v47, 1 }
 0x23b   :  { %v545_v49 = vadd.f32 %v544_v48, %v543_v47 }
 0x23d   :  { %643 = vpush %v545_v49 }
 0x265   :  { %s638_s2 = spop %637 }
 0x266   :  { %s640_s30 = spop %639 }
 0x267   :  { %s293_s6 = sadd.f32 %s640_s30, %s638_s2 }
 0x269   :  { %s642_s5 = spop %641 }
 0x26a   :  { %s420_s7 = sadd.f32 %s642_s5, %s293_s6 }
 0x26e   :  { %s644_s10 = spop %643 }
 0x26f   :  { %s547_s11 = sadd.f32 %s644_s10, %s420_s7 }
 0x271   :  { %v548_v50 = vstv %s547_s11 }
 0x272   :  { %550 = vst.msk [vmem:[#allocation2] sm:$0x1] %vm549_vm12, %v548_v50 }
 0x273   :  { %694 = shalt.err (!%p691_p4)
}
 0x274   :  { %s695_s16 = scalar_lea.hbm %s834_s4, 16 }
 0x275   :  { %p696_p5 = scmp.ne.s32.totalorder %s834_s4, %s695_s16  ;;  %p699_p6 = scmp.lt.u32.totalorder %s695_s16, %s834_s4 }
 0x277   :  { %p701_p7 = pnand %p699_p6, %p696_p5 }
 0x279   :  { %704 = shalt.err (!%p701_p7)
}
 0x27a   :  { %560 = dma.vmem_to_hbm [thread:$0]  %s558_s9, 16, %s834_s4, [#allocation3]  }
 0x27b   :  { %705 = dma.done.wait [#allocation3], 16  }
 0x27c   :  { %706 = vsyncadd [#allocation3], 4294967280 }
 0x27d   :  { %564 = vsyncpa [#allocation3], 1 }

// kernel: tpu_custom_call.1
= control target key start
LH: loop header
LB: loop body
LE: loop exit
PB: predicated region body
PF: predicated region fallthrough
CT: control target
= control target key end

     0   :  { %v707_v0 = vmov 1   ;;  %v708_v1 = vmov 0   ;;  %s830_s0 = inlined_call_operand.vmem [shape: f32[16,4], index: 0, kind: input, shape index: {}]   ;;  %s831_s1 = inlined_call_operand.vmem [shape: f32[4,16], index: 1, kind: input, shape index: {}]   ;;  %s832_s2 = inlined_call_operand.vmem [shape: f32[8,16], index: 2, kind: input, shape index: {}]   ;;  %s833_s3 = inlined_call_operand.vmem [shape: s8[16,16], index: 3, kind: input, shape index: {}]   ;;  %s834_s4 = inlined_call_operand.hbm [shape: f32[1,1,1], index: 4, kind: output, shape index: {}]  }
   0x1   :  { %654 = vset.pattern.permute.xlu1 %v707_v0  ;;  %653 = vset.pattern.permute.xlu0 %v708_v1  ;;  %v25_v2 = vld [vmem:[%s830_s0] sm:$0xff]  ;;  %v26_v3 = vld [vmem:[%s830_s0 + $0x8] sm:$0xff] }
   0x2   :  { %169 = vperm.xlu1 %654, %v25_v2   ;;  %30 = vperm.xlu0 %653, %v25_v2  }
   0x3   :  { %9 = vsyncpa [#allocation3], 0  ;;  %v709_v4 = vmov 2   ;;  %v710_v5 = vmov 3   ;;  %v711_v6 = vmov 0.0|0.0   ;;  %vm712_vm0 = vmmov 0  }
   0x4   :  { %621 = vmatprep.subr.bf16.mxu0 %v711_v6  ;;  %625 = vmatprep.subr.bf16.mxu1 %v711_v6  ;;  %v713_v7 = vmov 0.0   ;;  %v569_v8 = vld [vmem:[%s831_s1 + $0x1] ss:$0 sm:$0xff]  ;;  %v565_v9 = vld [vmem:[%s831_s1] ss:$0 sm:$0xff]  ;;  %vm48_vm1 = vcmask 130048  }
   0x5   :  { %597 = vmatprep.mubr.msk.f32.mxu0 %vm712_vm0, %v713_v7  ;;  %604 = vmatprep.mubr.msk.f32.mxu1 %vm712_vm0, %v713_v7  ;;  %v573_v24 = vld [vmem:[%s831_s1 + $0x2] ss:$0 sm:$0xff]  ;;  %v577_v39 = vld [vmem:[%s831_s1 + $0x3] ss:$0 sm:$0xff]  ;;  %vm155_vm11 = vcmask 122880   ;;  %s714_s8 = smov [#allocation2]  }
   0x6   :  { %173 = vperm.xlu1 %654, %v26_v3   ;;  %35 = vperm.xlu0 %653, %v26_v3   ;;  %s557_s9 = sshll.u32 %s714_s8, 4  ;;  %vm549_vm12 = vcmask 0   ;;  %s558_s9 = int_to_ptr.vmem [resolvable:$true] %s557_s9 }
   0x7   :  { %s683_s12 = scalar_lea.vmem %s558_s9, 16  ;;  %s687_s13 = scalar_lea.vmem %s558_s9, 32 }
   0x8   :  { %p684_p0 = scmp.ne.s32.totalorder %s558_s9, %s683_s12  ;;  %p688_p1 = scmp.lt.s32.totalorder %s558_s9, %s558_s9 }
   0x9   :  { %p689_p2 = scmp.lt.s32.totalorder %s687_s13, %s683_s12 }
   0xa   :  { %656 = vset.pattern.permute.xlu1 %v709_v4  ;;  %655 = vset.pattern.permute.xlu0 %v709_v4 }
   0xb   :  { %300 = vperm.xlu1 %656, %v26_v3   ;;  %296 = vperm.xlu0 %655, %v25_v2   ;;  %p690_p3 = por %p689_p2, %p688_p1 }
   0xd   :  { %p691_p4 = pnand %p690_p3, %p684_p0 }
   0xf   :  { %657 = vset.pattern.permute.xlu1 %v710_v5  ;;  %658 = vset.pattern.permute.xlu0 %v710_v5 }
  0x10   :  { %423 = vperm.xlu1 %657, %v25_v2   ;;  %427 = vperm.xlu0 %658, %v26_v3  }
  0x81   :  { %v170_v10 = vpop.permute.xlu1 %169  ;;  %v31_v11 = vpop.permute.xlu0 %30 }
  0x82   :  { %v180_v12 = vadd.f32 %v569_v8, %v170_v10  ;;  %v42_v13 = vadd.f32 %v565_v9, %v31_v11 }
  0x84   :  { %v182_v14 = vmul.f32 0.01, %v180_v12  ;;  %v44_v15 = vmul.f32 0.01, %v42_v13 }
  0x85   :  { %v174_v16 = vpop.permute.xlu1 %173  ;;  %v36_v17 = vpop.permute.xlu0 %35 }
  0x86   :  { %v181_v18 = vadd.f32 %v569_v8, %v174_v16  ;;  %v43_v19 = vadd.f32 %v565_v9, %v36_v17  ;;  %v759_v20 = vmax.f32 %v180_v12, %v182_v14  ;;  %v761_v21 = vmax.f32 %v42_v13, %v44_v15  ;;  %v20_v8 = vld [vmem:[%s833_s3] sm:$0x3]  ;;  %v21_v9 = vld [vmem:[%s833_s3 + $0x2] sm:$0x3] }
  0x87   :  { %vm22_vm2 = vnez %v20_v8  ;;  %vm23_vm3 = vnez %v21_v9 }
  0x88   :  { %v183_v22 = vmul.f32 0.01, %v181_v18  ;;  %v45_v23 = vmul.f32 0.01, %v43_v19  ;;  %v186_v31 = vsel %vm48_vm1, %v759_v20, -inf  ;;  %v49_v32 = vsel %vm48_vm1, %v761_v21, -inf }
  0x8a   :  { %v185_v25 = vmax.f32 %v181_v18, %v183_v22  ;;  %v47_v26 = vmax.f32 %v43_v19, %v45_v23  ;;  %v301_v27 = vpop.permute.xlu1 %300  ;;  %v297_v28 = vpop.permute.xlu0 %296 }
  0x8b   :  { %v308_v29 = vadd.f32 %v573_v24, %v301_v27  ;;  %v307_v30 = vadd.f32 %v573_v24, %v297_v28 }
  0x8c   :  { %v187_v33 = vsel %vm48_vm1, %v185_v25, -inf  ;;  %v50_v34 = vsel %vm48_vm1, %v47_v26, -inf }
  0x8d   :  { %v188_v35 = vmax.f32 %v186_v31, %v187_v33  ;;  %v51_v36 = vmax.f32 %v49_v32, %v50_v34  ;;  %v310_v37 = vmul.f32 0.01, %v308_v29  ;;  %v309_v38 = vmul.f32 0.01, %v307_v30 }
  0x8e   :  { %v65_v31 = vsel %vm23_vm3, 16843009, %v708_v1 }
  0x8f   :  { %v189_v40 = vrot.slane %v188_v35, 4  ;;  %v52_v41 = vrot.slane %v51_v36, 4  ;;  %v312_v42 = vmax.f32 %v308_v29, %v310_v37  ;;  %v311_v43 = vmax.f32 %v307_v30, %v309_v38  ;;  %v424_v44 = vpop.permute.xlu1 %423  ;;  %v428_v45 = vpop.permute.xlu0 %427 }
  0x90   :  { %v434_v46 = vadd.f32 %v577_v39, %v424_v44  ;;  %v435_v47 = vadd.f32 %v577_v39, %v428_v45  ;;  %v64_v30 = vsel %vm22_vm2, 16843009, %v708_v1 }
  0x91   :  { %v190_v48 = vmax.f32 %v188_v35, %v189_v40  ;;  %v53_v49 = vmax.f32 %v51_v36, %v52_v41  ;;  %v314_v50 = vsel %vm48_vm1, %v312_v42, -inf  ;;  %v313_v51 = vsel %vm48_vm1, %v311_v43, -inf }
  0x92   :  { %v315_v52 = vmax.f32 %v313_v51, %v314_v50  ;;  %v436_v53 = vmul.f32 0.01, %v434_v46  ;;  %v437_v54 = vmul.f32 0.01, %v435_v47  ;;  %v66_v34 = vunpack.c.0.s8 %v64_v30 }
  0x93   :  { %v191_v55 = vrot.slane %v190_v48, 2  ;;  %v54_v56 = vrot.slane %v53_v49, 2  ;;  %v67_v35 = vunpack.c.0.s8 %v65_v31 }
  0x94   :  { %v316_v57 = vrot.slane %v315_v52, 4  ;;  %v438_v58 = vmax.f32 %v434_v46, %v436_v53  ;;  %v439_v59 = vmax.f32 %v435_v47, %v437_v54  ;;  %vm68_vm4 = vcmp.ne.s32.totalorder %v66_v34, 0  ;;  %v24_v47 = vld [vmem:[%s832_s2] sm:$0xff] }
  0x95   :  { %v192_v60 = vmax.f32 %v190_v48, %v191_v55  ;;  %v55_v61 = vmax.f32 %v53_v49, %v54_v56  ;;  %vm69_vm5 = vcmp.ne.s32.totalorder %v67_v35, 0 }
  0x96   :  { %v317_v62 = vmax.f32 %v315_v52, %v316_v57  ;;  %v440_v63 = vsel %vm48_vm1, %v438_v58, -inf  ;;  %v441_v0 = vsel %vm48_vm1, %v439_v59, -inf  ;;  %vm789_vm6 = vmpackc.low %vm69_vm5, %vm68_vm4 }
  0x97   :  { %v193_v2 = vrot.slane %v192_v60, 1  ;;  %v56_v3 = vrot.slane %v55_v61, 1  ;;  %v442_v4 = vmax.f32 %v440_v63, %v441_v0 }
  0x98   :  { %v318_v5 = vrot.slane %v317_v62, 2 }
  0x99   :  { %v194_v10 = vmax.f32 %v192_v60, %v193_v2  ;;  %v57_v11 = vmax.f32 %v55_v61, %v56_v3  ;;  %v443_v12 = vrot.slane %v442_v4, 4 }
  0x9a   :  { %v319_v13 = vmax.f32 %v317_v62, %v318_v5 }
  0x9b   :  { %v195_v14 = vsub.f32 %v759_v20, %v194_v10  ;;  %v196_v15 = vsub.f32 %v185_v25, %v194_v10  ;;  %v58_v16 = vsub.f32 %v761_v21, %v57_v11  ;;  %v59_v17 = vsub.f32 %v47_v26, %v57_v11 }
  0x9c   :  { %v320_v18 = vrot.slane %v319_v13, 1  ;;  %v444_v19 = vmax.f32 %v442_v4, %v443_v12 }
  0x9d   :  { %v197_v22 = vmul.f32 1.442695, %v195_v14  ;;  %v199_v23 = vmul.f32 1.442695, %v196_v15  ;;  %v60_v24 = vmul.f32 1.442695, %v58_v16 }
  0x9e   :  { %v62_v27 = vmul.f32 1.442695, %v59_v17  ;;  %v321_v28 = vmax.f32 %v319_v13, %v320_v18  ;;  %v445_v29 = vrot.slane %v444_v19, 2 }
  0x9f   :  { %659 = vpow2.f32 %v197_v22 }
  0xa0   :  { %661 = vpow2.f32 %v199_v23  ;;  %v322_v20 = vsub.f32 %v311_v43, %v321_v28  ;;  %v323_v25 = vsub.f32 %v312_v42, %v321_v28  ;;  %v446_v21 = vmax.f32 %v444_v19, %v445_v29 }
  0xa1   :  { %663 = vpow2.f32 %v60_v24 }
  0xa2   :  { %665 = vpow2.f32 %v62_v27  ;;  %v324_v26 = vmul.f32 1.442695, %v322_v20  ;;  %v326_v32 = vmul.f32 1.442695, %v323_v25  ;;  %v447_v33 = vrot.slane %v446_v21, 1 }
  0xa4   :  { %667 = vpow2.f32 %v324_v26  ;;  %v448_v36 = vmax.f32 %v446_v21, %v447_v33 }
  0xa5   :  { %669 = vpow2.f32 %v326_v32 }
  0xa6   :  { %v449_v37 = vsub.f32 %v438_v58, %v448_v36  ;;  %v450_v38 = vsub.f32 %v439_v59, %v448_v36 }
  0xa8   :  { %v451_v1 = vmul.f32 1.442695, %v449_v37  ;;  %v453_v39 = vmul.f32 1.442695, %v450_v38 }
  0xa9   :  { %v660_v40 = vpop.eup %659 }
  0xaa   :  { %v662_v41 = vpop.eup %661  ;;  %671 = vpow2.f32 %v451_v1 }
  0xab   :  { %v664_v43 = vpop.eup %663  ;;  %673 = vpow2.f32 %v453_v39  ;;  %v626_v44 = vpack.c.bf16 %v662_v41, %v660_v40 }
  0xac   :  { %v666_v45 = vpop.eup %665 }
  0xad   :  { %v622_v46 = vpack.c.bf16 %v666_v45, %v664_v43  ;;  %628 = vmatpush3.bf16.msk.msra.mxu1 %vm789_vm6, %v626_v44 }
  0xae   :  { %v668_v48 = vpop.eup %667  ;;  %633 = vmatprep.subr.bf16.mxu1 %v711_v6 }
  0xaf   :  { %v670_v49 = vpop.eup %669  ;;  %624 = vmatpush3.bf16.msk.msra.mxu0 %vm789_vm6, %v622_v46 }
  0xb0   :  { %605 = vmatmul.mubr.msk.f32.vlgmr.msra.gmra.mrb[0].mxu1 %vm48_vm1, %v24_v47  ;;  %629 = vmatprep.subr.bf16.mxu0 %v711_v6  ;;  %v630_v50 = vpack.c.bf16 %v670_v49, %v668_v48 }
  0xb1   :  { %618 = vmatprep.mubr.msk.f32.mxu1 %vm712_vm0, %v713_v7 }
  0xb2   :  { %598 = vmatmul.mubr.msk.f32.vlgmr.msra.gmra.mrb[0].mxu0 %vm48_vm1, %v24_v47 }
  0xb3   :  { %632 = vmatpush3.bf16.msk.msra.mxu0 %vm789_vm6, %v630_v50  ;;  %611 = vmatprep.mubr.msk.f32.mxu0 %vm712_vm0, %v713_v7 }
  0xb4   :  { %v672_v51 = vpop.eup %671 }
  0xb5   :  { %v674_v52 = vpop.eup %673 }
  0xb6   :  { %612 = vmatmul.mubr.msk.f32.vlgmr.msra.gmra.mrb[2].mxu0 %vm48_vm1, %v24_v47  ;;  %v634_v53 = vpack.c.bf16 %v674_v52, %v672_v51 }
  0xb8   :  { %636 = vmatpush3.bf16.msk.msra.mxu1 %vm789_vm6, %v634_v53 }
  0xbb   :  { %619 = vmatmul.mubr.msk.f32.vlgmr.msra.gmra.mrb[2].mxu1 %vm48_vm1, %v24_v47 }
 0x183   :  { %v269_v6 = vpop.f32.mrb[0].mxu1 }
 0x184   :  { %vm273_vm7 = vcmp.gt.f32.partialorder %v269_v6, 0.0  ;;  %v606_v54 = vpop.f32.mrb[1].mxu1 }
 0x185   :  { %v141_v55 = vpop.f32.mrb[0].mxu0  ;;  %v274_v56 = vsel %vm273_vm7, %v269_v6, 1.0 }
 0x186   :  { %vm145_vm8 = vcmp.gt.f32.partialorder %v141_v55, 0.0  ;;  %675 = vrcp.f32 %v274_v56  ;;  %v599_v57 = vpop.f32.mrb[1].mxu0 }
 0x187   :  { %v146_v58 = vsel %vm145_vm8, %v141_v55, 1.0 }
 0x188   :  { %677 = vrcp.f32 %v146_v58 }
 0x189   :  { %v396_v7 = vpop.f32.mrb[2].mxu0 }
 0x18a   :  { %vm400_vm9 = vcmp.gt.f32.partialorder %v396_v7, 0.0  ;;  %v613_v59 = vpop.f32.mrb[3].mxu0 }
 0x18b   :  { %v401_v60 = vsel %vm400_vm9, %v396_v7, 1.0 }
 0x18c   :  { %679 = vrcp.f32 %v401_v60 }
 0x18e   :  { %v523_v61 = vpop.f32.mrb[2].mxu1 }
 0x18f   :  { %vm527_vm10 = vcmp.gt.f32.partialorder %v523_v61, 0.0  ;;  %v620_v62 = vpop.f32.mrb[3].mxu1 }
 0x190   :  { %v676_v63 = vpop.eup %675  ;;  %v528_v0 = vsel %vm527_vm10, %v523_v61, 1.0 }
 0x191   :  { %681 = vrcp.f32 %v528_v0  ;;  %v277_v2 = vrot.slane %v676_v63, 6 }
 0x192   :  { %v678_v3 = vpop.eup %677 }
 0x193   :  { %v279_v4 = vmul.f32 %v277_v2, %v269_v6  ;;  %v149_v5 = vrot.slane %v678_v3, 7 }
 0x195   :  { %v281_v8 = vrot.slane %v279_v4, 2  ;;  %v151_v9 = vmul.f32 %v149_v5, %v141_v55 }
 0x196   :  { %v680_v10 = vpop.eup %679 }
 0x197   :  { %v283_v11 = vsel %vm155_vm11, %v281_v8, 0.0  ;;  %v153_v12 = vrot.slane %v151_v9, 1  ;;  %v404_v13 = vrot.slane %v680_v10, 5 }
 0x198   :  { %284 = vadd.xlane.f32.xlu0 %v283_v11 }
 0x199   :  { %v156_v14 = vsel %vm155_vm11, %v153_v12, 0.0  ;;  %v406_v15 = vmul.f32 %v404_v13, %v396_v7 }
 0x19a   :  { %157 = vadd.xlane.f32.xlu1 %v156_v14 }
 0x19b   :  { %v682_v16 = vpop.eup %681  ;;  %v408_v17 = vrot.slane %v406_v15, 3 }
 0x19c   :  { %v531_v18 = vrot.slane %v682_v16, 4 }
 0x19d   :  { %v410_v19 = vsel %vm155_vm11, %v408_v17, 0.0 }
 0x19e   :  { %411 = vadd.xlane.f32.xlu1 %v410_v19  ;;  %v533_v22 = vmul.f32 %v531_v18, %v523_v61 }
 0x1a0   :  { %v535_v23 = vrot.slane %v533_v22, 4 }
 0x1a2   :  { %v537_v24 = vsel %vm155_vm11, %v535_v23, 0.0 }
 0x1a3   :  { %538 = vadd.xlane.f32.xlu0 %v537_v24 }
 0x225   :  { %v285_v27 = vpop.xlane.xlu0 %284 }
 0x226   :  { %v286_v28 = vrot.slane %v285_v27, 4 }
 0x227   :  { %v158_v29 = vpop.xlane.xlu1 %157 }
 0x228   :  { %v287_v30 = vadd.f32 %v286_v28, %v285_v27  ;;  %v159_v31 = vrot.slane %v158_v29, 4 }
 0x22a   :  { %v288_v20 = vrot.slane %v287_v30, 2  ;;  %v160_v25 = vadd.f32 %v159_v31, %v158_v29 }
 0x22b   :  { %v412_v21 = vpop.xlane.xlu1 %411 }
 0x22c   :  { %v161_v26 = vrot.slane %v160_v25, 2  ;;  %v413_v32 = vrot.slane %v412_v21, 4  ;;  %v289_v33 = vadd.f32 %v288_v20, %v287_v30 }
 0x22e   :  { %v414_v34 = vadd.f32 %v413_v32, %v412_v21  ;;  %v162_v35 = vadd.f32 %v161_v26, %v160_v25  ;;  %v290_v36 = vrot.slane %v289_v33, 1 }
 0x230   :  { %v415_v37 = vrot.slane %v414_v34, 2  ;;  %v539_v38 = vpop.xlane.xlu0 %538  ;;  %v163_v1 = vrot.slane %v162_v35, 1  ;;  %v291_v40 = vadd.f32 %v290_v36, %v289_v33 }
 0x231   :  { %v540_v39 = vrot.slane %v539_v38, 4 }
 0x232   :  { %v416_v41 = vadd.f32 %v415_v37, %v414_v34  ;;  %v164_v42 = vadd.f32 %v163_v1, %v162_v35 }
 0x233   :  { %v541_v43 = vadd.f32 %v540_v39, %v539_v38 }
 0x234   :  { %637 = vpush %v164_v42  ;;  %v417_v44 = vrot.slane %v416_v41, 1 }
 0x235   :  { %v542_v45 = vrot.slane %v541_v43, 2  ;;  %639 = vpush %v291_v40 }
 0x236   :  { %v418_v46 = vadd.f32 %v417_v44, %v416_v41 }
 0x237   :  { %v543_v47 = vadd.f32 %v542_v45, %v541_v43 }
 0x238   :  { %641 = vpush %v418_v46 }
 0x239   :  { %v544_v48 = vrot.slane %v543_v47, 1 }
 0x23b   :  { %v545_v49 = vadd.f32 %v544_v48, %v543_v47 }
 0x23d   :  { %643 = vpush %v545_v49 }
 0x265   :  { %s638_s2 = spop %637 }
 0x266   :  { %s640_s30 = spop %639 }
 0x267   :  { %s293_s6 = sadd.f32 %s640_s30, %s638_s2 }
 0x269   :  { %s642_s5 = spop %641 }
 0x26a   :  { %s420_s7 = sadd.f32 %s642_s5, %s293_s6 }
 0x26e   :  { %s644_s10 = spop %643 }
 0x26f   :  { %s547_s11 = sadd.f32 %s644_s10, %s420_s7 }
 0x271   :  { %v548_v50 = vstv %s547_s11 }
 0x272   :  { %550 = vst.msk [vmem:[#allocation2] sm:$0x1] %vm549_vm12, %v548_v50 }
 0x273   :  { %694 = shalt.err (!%p691_p4)
}
 0x274   :  { %s695_s16 = scalar_lea.hbm %s834_s4, 16 }
 0x275   :  { %p696_p5 = scmp.ne.s32.totalorder %s834_s4, %s695_s16  ;;  %p699_p6 = scmp.lt.u32.totalorder %s695_s16, %s834_s4 }
 0x277   :  { %p701_p7 = pnand %p699_p6, %p696_p5 }
 0x279   :  { %704 = shalt.err (!%p701_p7)
}
 0x27a   :  { %560 = dma.vmem_to_hbm [thread:$0]  %s558_s9, 16, %s834_s4, [#allocation3]  }
 0x27b   :  { %705 = dma.done.wait [#allocation3], 16  }
 0x27c   :  { %706 = vsyncadd [#allocation3], 4294967280 }
 0x27d   :  { %564 = vsyncpa [#allocation3], 1 }

</bundles_post_ra>
